<compile_context>
chip_gen: v6e
topology: v6e:2x2x1
jax: 0.10.0
libtpu: 0.0.40
codegen_flags: <defaults>
</compile_context>

<pallas_src>
import jax
import jax.numpy as jnp
from jax.experimental import pallas as pl
from jax.experimental.pallas import tpu as pltpu


def fused_affine_kernel(x_ref, w_ref, b_ref, o_ref):
    # (TB, 3) @ (3, 2) + (1, 2) -> (TB, 2), f32 accumulation on the MXU.
    y = jnp.dot(x_ref[...], w_ref[...], preferred_element_type=jnp.float32)
    o_ref[...] = (y + b_ref[...]).astype(o_ref.dtype)


def neural_network_model(x, params, *, block_b=512):
    """Forward pass equivalent to output_layer(hidden_layer(input_layer(x)))."""
    w1, b1, w2, b2, w3, b3 = params

    # Fold the activation-free layer chain into one affine map.  These are
    # O(10)-flop XLA ops in the wrapper and constant-fold under jit.
    w_eff = (w1 @ w2) @ w3                # (3, 2)
    b_eff = (b1 @ w2 + b2) @ w3 + b3      # (1, 2)

    B, K = x.shape
    N = w_eff.shape[1]

    # Batch tile: whole batch if it fits, otherwise the largest sublane-aligned
    # tile <= block_b (block_b itself is already a multiple of 8).
    if B <= block_b:
        tb = B
    else:
        tb = max(8, (block_b // 8) * 8)
    grid = (pl.cdiv(B, tb),)

    return pl.pallas_call(
        fused_affine_kernel,
        out_shape=jax.ShapeDtypeStruct((B, N), x.dtype),
        grid_spec=pltpu.PrefetchScalarGridSpec(
            num_scalar_prefetch=0,
            grid=grid,
            in_specs=[
                pl.BlockSpec((tb, K), lambda i: (i, 0)),   # x tile, pipelined
                pl.BlockSpec((K, N), lambda i: (0, 0)),    # W_eff, resident
                pl.BlockSpec((1, N), lambda i: (0, 0)),    # b_eff, resident
            ],
            out_specs=pl.BlockSpec((tb, N), lambda i: (i, 0)),
        ),
        compiler_params=pltpu.CompilerParams(
            # Batch axis is embarrassingly parallel -> megacore sharding on v7x.
            dimension_semantics=("parallel",),
        ),
    )(x, w_eff, b_eff)


def init_params(key):
    """Deterministic init mimicking PyTorch's default Linear init
    (uniform(-1/sqrt(fan_in), 1/sqrt(fan_in)))."""
    def linear(key, fan_in, fan_out):
        kw, kb = jax.random.split(key)
        bound = 1.0 / jnp.sqrt(fan_in)
        # Stored as (in, out) so the math is x @ W.
        w = jax.random.uniform(kw, (fan_in, fan_out), jnp.float32, -bound, bound)
        b = jax.random.uniform(kb, (1, fan_out), jnp.float32, -bound, bound)
        return w, b

    k1, k2, k3 = jax.random.split(key, 3)
    w1, b1 = linear(k1, 3, 4)   # input_layer
    w2, b2 = linear(k2, 4, 4)   # hidden_layer
    w3, b3 = linear(k3, 4, 2)   # output_layer
    return (w1, b1, w2, b2, w3, b3)


if __name__ == "__main__":
    key = jax.random.PRNGKey(0)
    kp, kx = jax.random.split(key)

    params = init_params(kp)
    batch = 8
    x = jax.random.normal(kx, (batch, 3), jnp.float32)

    out = neural_network_model(x, params)
    jax.block_until_ready(out)

    # Pure-JAX reference (same semantics as the PyTorch forward, un-fused).
    w1, b1, w2, b2, w3, b3 = params
    ref = ((x @ w1 + b1) @ w2 + b2) @ w3 + b3
    assert out.shape == (batch, 2)
    assert jnp.allclose(out, ref, atol=1e-5, rtol=1e-5)

    print("KERNEL_OK")
</pallas_src>

<mosaic_0001>
module attributes {stable_mosaic.version = 11 : i64} {
  func.func @fused_affine_kernel(%arg0: i32, %arg1: memref<8x3xf32, #tpu.memory_space<vmem>>, %arg2: memref<3x2xf32, #tpu.memory_space<vmem>>, %arg3: memref<1x2xf32, #tpu.memory_space<vmem>>, %arg4: memref<8x2xf32, #tpu.memory_space<vmem>>) attributes {dimension_semantics = [#tpu.dimension_semantics<parallel>], iteration_bounds = array<i64: 1>, scalar_prefetch = 0 : i64, scratch_operands = 0 : i64, tpu.core_type = #tpu.core_type<tc>, window_params = [{transform_indices = @transform_0, window_bounds = array<i64: 8, 3>}, {pipeline_mode = #tpu.pipeline_mode<synchronous>, transform_indices = @transform_1, window_bounds = array<i64: 3, 2>}, {pipeline_mode = #tpu.pipeline_mode<synchronous>, transform_indices = @transform_2, window_bounds = array<i64: 1, 2>}, {transform_indices = @transform_3, window_bounds = array<i64: 8, 2>}]} {
    %c0 = arith.constant 0 : index
    %c0_0 = arith.constant 0 : index
    %0 = vector.load %arg1[%c0, %c0_0] : memref<8x3xf32, #tpu.memory_space<vmem>>, vector<8x3xf32>
    %c0_1 = arith.constant 0 : index
    %c0_2 = arith.constant 0 : index
    %1 = vector.load %arg2[%c0_1, %c0_2] : memref<3x2xf32, #tpu.memory_space<vmem>>, vector<3x2xf32>
    %cst = arith.constant dense<0.000000e+00> : vector<8x2xf32>
    %2 = tpu.matmul %0, %1, %cst {dimension_numbers = #tpu.dot_dimension_numbers<[1], [0], [0], [1], [0, 0, 1, 1], [], []>} : vector<8x3xf32>, vector<3x2xf32>, vector<8x2xf32> -> vector<8x2xf32>
    %c0_3 = arith.constant 0 : index
    %c0_4 = arith.constant 0 : index
    %3 = vector.load %arg3[%c0_3, %c0_4] : memref<1x2xf32, #tpu.memory_space<vmem>>, vector<1x2xf32>
    %4 = vector.broadcast %3 : vector<1x2xf32> to vector<8x2xf32>
    %5 = arith.addf %2, %4 : vector<8x2xf32>
    %c0_5 = arith.constant 0 : index
    %c0_6 = arith.constant 0 : index
    %6 = vector.load %arg4[%c0_5, %c0_6] : memref<8x2xf32, #tpu.memory_space<vmem>>, vector<8x2xf32>
    tpu.vector_store %arg4[%c0_5, %c0_6], %5 {strides = array<i32>} : memref<8x2xf32, #tpu.memory_space<vmem>>, vector<8x2xf32>,
    return
  }
  func.func @transform_0(%arg0: i32) -> (i32, i32) {
    %c0_i32 = arith.constant 0 : i32
    %c0_i32_0 = arith.constant 0 : i32
    return %arg0, %c0_i32 : i32, i32
  }
  func.func @transform_1(%arg0: i32) -> (i32, i32) {
    %c0_i32 = arith.constant 0 : i32
    %c0_i32_0 = arith.constant 0 : i32
    %c0_i32_1 = arith.constant 0 : i32
    return %c0_i32, %c0_i32_0 : i32, i32
  }
  func.func @transform_2(%arg0: i32) -> (i32, i32) {
    %c0_i32 = arith.constant 0 : i32
    %c0_i32_0 = arith.constant 0 : i32
    %c0_i32_1 = arith.constant 0 : i32
    return %c0_i32, %c0_i32_0 : i32, i32
  }
  func.func @transform_3(%arg0: i32) -> (i32, i32) {
    %c0_i32 = arith.constant 0 : i32
    %c0_i32_0 = arith.constant 0 : i32
    return %arg0, %c0_i32 : i32, i32
  }
}

</mosaic_0001>

<bundles_post_ra>
// kernel: tpu_custom_call.1
= control target key start
LH: loop header
LB: loop body
LE: loop exit
PB: predicated region body
PF: predicated region fallthrough
CT: control target
= control target key end

     0   :  { %vm27_vm0 = vcmask 1042432   ;;  %vm23_vm1 = vcmask 23552   ;;  %v119_v0 = vmov 0.0   ;;  %vm120_vm2 = vmmov 0   ;;  %s153_s1 = inlined_call_operand.vmem [shape: f32[3,2], index: 1, kind: input, shape index: {}]   ;;  %s154_s0 = inlined_call_operand.vmem [shape: f32[8,3], index: 0, kind: input, shape index: {}]   ;;  %s155_s2 = inlined_call_operand.vmem [shape: f32[1,2], index: 2, kind: input, shape index: {}]   ;;  %s156_s3 = inlined_call_operand.vmem [shape: f32[8,2], index: 3, kind: output, shape index: {}]  }
   0x1   :  { %112 = vmatprep.subr.mxu0 %v119_v0  ;;  %v15_v1 = vld [vmem:[%s153_s1] sm:$0x7]  ;;  %114 = vmatprep.mubr.msk.f32.mxu0 %vm120_vm2, %v119_v0  ;;  %vm101_vm3 = vcmask 15360  }
   0x2   :  { %v14_v2 = vld [vmem:[%s154_s0] sm:$0xff]  ;;  %113 = vmatpush3.msk.msra.mxu0 %vm27_vm0, %v15_v1 }
   0x3   :  { %115 = vmatmul.mubr.msk.f32.vlgmr.msra.gmra.mxu0 %vm23_vm1, %v14_v2  ;;  %v107_v3 = vld [vmem:[%s155_s2] ss:$0 sm:$0xff] }
  0xc3   :  { %v97_v4 = vpop.f32.mrf.mxu0 }
  0xc4   :  { %v98_v5 = vadd.f32 %v107_v3, %v97_v4 }
  0xc5   :  { %v116_v6 = vpop.f32.mrf.mxu0 }
  0xc6   :  { %102 = vst.msk [vmem:[%s156_s3] sm:$0xff] %vm101_vm3, %v98_v5 }

</bundles_post_ra>
